<compile_context>
chip_gen: v7x
topology: tpu7x:2x2x1
jax: 0.10.0
libtpu: 0.0.40
codegen_flags: <defaults>
</compile_context>

<pallas_src>
import functools

import jax
import jax.numpy as jnp
from jax import lax
from jax.experimental import pallas as pl
from jax.experimental.pallas import tpu as pltpu

n_embd = 32


def _round_up(x, m):
    return (x + m - 1) // m * m


def ffn_kernel(x_ref, w1_ref, b1_ref, w2_ref, b2_ref, o_ref, *, bchunk, n_chunks):
    """Two MXU matmuls + f32 bias/ReLU on lane-dense (rows, 128*k) tiles,
    processed in `bchunk`-row sub-tiles to bound the f32 intermediate."""
    w1 = w1_ref[...]
    w2 = w2_ref[...]
    b1 = b1_ref[...].astype(jnp.float32)
    b2 = b2_ref[...].astype(jnp.float32)
    mxu_dtype = w1.dtype  # bf16-packed weights => bf16 MXU feed, f32 accumulate

    def compute(x):
        h = jnp.dot(x.astype(mxu_dtype), w1, preferred_element_type=jnp.float32)
        h = jnp.maximum(h + b1, 0.0)                       # f32 bias + ReLU (VPU)
        y = jnp.dot(h.astype(mxu_dtype), w2, preferred_element_type=jnp.float32)
        return y + b2

    if n_chunks == 1:
        o_ref[...] = compute(x_ref[...]).astype(o_ref.dtype)
    else:
        def chunk(c, carry):
            r0 = pl.multiple_of(c * bchunk, bchunk)
            xc = x_ref[pl.ds(r0, bchunk), :]
            o_ref[pl.ds(r0, bchunk), :] = compute(xc).astype(o_ref.dtype)
            return carry

        lax.fori_loop(0, n_chunks, chunk, 0, unroll=True)


def pack_ffn_params(w1, b1, w2, b2, *, dtype=None):
    """Fold the p-token lane packing into block-diagonal weights.

    Call ONCE at parameter-load time (not per forward call).  Pass
    dtype=jnp.bfloat16 to ship bf16 weights -> bf16 MXU feed for f32
    activations (recommended on v5e/v6e; slightly looser numerics).
    """
    C, H = w1.shape
    p = 128 // C if (C < 128 and 128 % C == 0) else 1
    if dtype is not None:
        w1, b1, w2, b2 = (t.astype(dtype) for t in (w1, b1, w2, b2))
    b1 = b1.reshape(1, H)
    b2 = b2.reshape(1, C)
    if p == 1:
        # TODO(synk): p=1 fallback (C >= 128 or 128 % C != 0) re-introduces
        # lane-masked loads/stores when C is not a multiple of 128.
        return w1, b1, w2, b2
    eye = jnp.eye(p, dtype=w1.dtype)
    w1p = jnp.kron(eye, w1)          # (p*C, p*H) block-diagonal
    w2p = jnp.kron(eye, w2)          # (p*H, p*C) block-diagonal
    b1p = jnp.tile(b1, (1, p))       # (1, p*H)
    b2p = jnp.tile(b2, (1, p))       # (1, p*C)
    return w1p, b1p, w2p, b2p


def _pick_block_rows(rows, row_bytes, sub, block_rows):
    """Packed-row tile size: sublane-aligned, <= rows (ragged last block OK)."""
    if block_rows is not None:
        bm = min(block_rows, rows)
        if bm < rows:
            bm = max(sub, bm // sub * sub)
        return bm
    # Target ~2 MiB of x per grid step (~4 MiB x+out): amortizes the ~0.35 us
    # fixed per-step pipeline cost even at v7x HBM bandwidth.
    bm = max(sub, (2 << 20) // row_bytes // sub * sub)     # 4096 f32 / 8192 bf16
    if rows <= bm:
        if rows >= 2 * sub and rows * row_bytes >= (1 << 20):
            # Big enough to split into 2 steps -> feed both v7x TensorCores.
            bm = pl.cdiv(pl.cdiv(rows, 2), sub) * sub
        else:
            bm = rows          # single block; block dim == array dim is legal
    return bm


@functools.partial(jax.jit, static_argnames=("block_rows",))
def feed_forward(x, w1p, b1p, w2p, b2p, *, block_rows=None):
    """x: (B, T, C).  w1p/b1p/w2p/b2p: packed params from pack_ffn_params."""
    B, T, C = x.shape
    Cp, Hp = w1p.shape
    p = Cp // C
    M = B * T
    dtype = x.dtype
    itemsize = jnp.dtype(dtype).itemsize
    w_itemsize = jnp.dtype(w1p.dtype).itemsize
    sub = 8 if itemsize >= 4 else (16 if itemsize == 2 else 32)

    # Packed-row geometry: pad only to a multiple of p (<= p-1 = 3 tokens, and
    # only when M % p != 0) — no full-array pad / post-slice round trip.
    rows = pl.cdiv(M, p)
    x2d = x.reshape(M, C)
    if rows * p != M:
        x2d = jnp.pad(x2d, ((0, rows * p - M), (0, 0)))
    x_packed = x2d.reshape(rows, Cp)                        # lane-dense (rows, 128*k)

    bm = _pick_block_rows(rows, Cp * itemsize, sub, block_rows)
    n_blocks = pl.cdiv(rows, bm)                            # ragged last block OK

    # In-kernel sub-tiling: keep the f32 h intermediate ~1 MiB per chunk.
    bchunk = 512 if (bm > 512 and bm % 512 == 0) else bm
    n_chunks = bm // bchunk

    # Executed cost (kron zeros included; p^2-expanded weights).
    flops = 4 * n_blocks * bm * Cp * Hp
    bytes_accessed = (2 * rows * Cp) * itemsize + (2 * Cp * Hp + Hp + Cp) * w_itemsize

    kernel = functools.partial(ffn_kernel, bchunk=bchunk, n_chunks=n_chunks)

    out_packed = pl.pallas_call(
        kernel,
        out_shape=jax.ShapeDtypeStruct((rows, Cp), dtype),
        grid_spec=pltpu.PrefetchScalarGridSpec(
            num_scalar_prefetch=0,
            grid=(n_blocks,),
            in_specs=[
                pl.BlockSpec((bm, Cp), lambda i: (i, 0)),   # x tile (pipelined)
                pl.BlockSpec((Cp, Hp), lambda i: (0, 0)),   # W1 (constant -> DMA'd once)
                pl.BlockSpec((1, Hp), lambda i: (0, 0)),    # b1
                pl.BlockSpec((Hp, Cp), lambda i: (0, 0)),   # W2 (constant -> DMA'd once)
                pl.BlockSpec((1, Cp), lambda i: (0, 0)),    # b2
            ],
            out_specs=pl.BlockSpec((bm, Cp), lambda i: (i, 0)),
        ),
        compiler_params=pltpu.CompilerParams(
            dimension_semantics=("parallel",),              # shard M across v7x's 2 TCs
            vmem_limit_bytes=32 * 1024 * 1024,              # tiles+scratch <= ~15 MiB
        ),
        cost_estimate=pl.CostEstimate(
            flops=flops, transcendentals=0, bytes_accessed=bytes_accessed),
    )(x_packed, w1p, b1p, w2p, b2p)

    out2d = out_packed.reshape(rows * p, C)
    if rows * p != M:
        out2d = out2d[:M]
    return out2d.reshape(B, T, C)


def ffn_ref(x, w1, b1, w2, b2):
    """Plain-JAX reference, same math as the PyTorch module."""
    h = jnp.maximum(x @ w1 + b1.reshape(-1), 0.0)
    return h @ w2 + b2.reshape(-1)


def init_params(key, n_embd, dtype=jnp.float32):
    """nn.Linear-default init: U(-1/sqrt(fan_in), +1/sqrt(fan_in)); stored (in, out)."""
    hidden = 4 * n_embd
    k1, k2, k3, k4 = jax.random.split(key, 4)
    bound1 = 1.0 / (n_embd ** 0.5)
    bound2 = 1.0 / (hidden ** 0.5)
    w1 = jax.random.uniform(k1, (n_embd, hidden), dtype, -bound1, bound1)
    b1 = jax.random.uniform(k2, (1, hidden), dtype, -bound1, bound1)
    w2 = jax.random.uniform(k3, (hidden, n_embd), dtype, -bound2, bound2)
    b2 = jax.random.uniform(k4, (1, n_embd), dtype, -bound2, bound2)
    return w1, b1, w2, b2


if __name__ == "__main__":
    key = jax.random.PRNGKey(0)
    kx, kp, kx2, kx3, kx4 = jax.random.split(key, 5)

    w1, b1, w2, b2 = init_params(kp, n_embd)
    packed_f32 = pack_ffn_params(w1, b1, w2, b2)                      # exact path
    packed_bf16 = pack_ffn_params(w1, b1, w2, b2, dtype=jnp.bfloat16)  # bf16 MXU feed

    # 1) Small shape implied by the module (B=2, T=8, C=32), f32, exact path.
    B, T, C = 2, 8, n_embd
    x = jax.random.normal(kx, (B, T, C), jnp.float32)
    out = jax.block_until_ready(feed_forward(x, *packed_f32))
    ref = ffn_ref(x, w1, b1, w2, b2)
    assert out.shape == (B, T, C)
    assert jnp.allclose(out, ref, atol=1e-5, rtol=1e-5)

    # 2) Ragged token count (M % p != 0 -> <=3-token pad path).
    x2 = jax.random.normal(kx2, (3, 7, C), jnp.float32)
    out2 = jax.block_until_ready(feed_forward(x2, *packed_f32))
    assert jnp.allclose(out2, ffn_ref(x2, w1, b1, w2, b2), atol=1e-5, rtol=1e-5)

    # 3) Multi-step grid with a ragged LAST block (cdiv grid, masked writeback).
    x3 = jax.random.normal(kx3, (2, 500, C), jnp.float32)             # rows=250
    out3 = jax.block_until_ready(feed_forward(x3, *packed_f32, block_rows=64))
    assert jnp.allclose(out3, ffn_ref(x3, w1, b1, w2, b2), atol=1e-5, rtol=1e-5)

    # 4) Larger M exercising the adaptive tile + in-kernel sub-chunk loop.
    x4 = jax.random.normal(kx4, (8, 1024, C), jnp.float32)            # rows=2048
    out4 = jax.block_until_ready(feed_forward(x4, *packed_f32))
    assert jnp.allclose(out4, ffn_ref(x4, w1, b1, w2, b2), atol=1e-5, rtol=1e-5)

    # 5) bf16 activations + bf16 packed weights (bf16 MXU, f32 accumulate).
    xb = x.astype(jnp.bfloat16)
    outb = jax.block_until_ready(feed_forward(xb, *packed_bf16))
    refb = ffn_ref(xb.astype(jnp.float32), w1, b1, w2, b2)
    assert jnp.allclose(outb.astype(jnp.float32), refb, atol=1e-1, rtol=1e-1)

    # 6) f32 activations + bf16 packed weights (v5e/v6e fast path, loose tol).
    outm = jax.block_until_ready(feed_forward(x, *packed_bf16))
    assert jnp.allclose(outm, ref, atol=5e-2, rtol=5e-2)

    print("KERNEL_OK")
</pallas_src>

<mosaic_0001>
module attributes {stable_mosaic.version = 11 : i64} {
  func.func @ffn_kernel(%arg0: i32, %arg1: memref<4x128xf32, #tpu.memory_space<vmem>>, %arg2: memref<128x512xf32, #tpu.memory_space<vmem>>, %arg3: memref<1x512xf32, #tpu.memory_space<vmem>>, %arg4: memref<512x128xf32, #tpu.memory_space<vmem>>, %arg5: memref<1x128xf32, #tpu.memory_space<vmem>>, %arg6: memref<4x128xf32, #tpu.memory_space<vmem>>) attributes {dimension_semantics = [#tpu.dimension_semantics<parallel>], iteration_bounds = array<i64: 1>, scalar_prefetch = 0 : i64, scratch_operands = 0 : i64, tpu.core_type = #tpu.core_type<tc>, window_params = [{transform_indices = @transform_0, window_bounds = array<i64: 4, 128>}, {pipeline_mode = #tpu.pipeline_mode<synchronous>, transform_indices = @transform_1, window_bounds = array<i64: 128, 512>}, {pipeline_mode = #tpu.pipeline_mode<synchronous>, transform_indices = @transform_2, window_bounds = array<i64: 1, 512>}, {pipeline_mode = #tpu.pipeline_mode<synchronous>, transform_indices = @transform_3, window_bounds = array<i64: 512, 128>}, {pipeline_mode = #tpu.pipeline_mode<synchronous>, transform_indices = @transform_4, window_bounds = array<i64: 1, 128>}, {transform_indices = @transform_5, window_bounds = array<i64: 4, 128>}]} {
    %c0 = arith.constant 0 : index
    %c0_0 = arith.constant 0 : index
    %0 = vector.load %arg2[%c0, %c0_0] : memref<128x512xf32, #tpu.memory_space<vmem>>, vector<128x512xf32>
    %c0_1 = arith.constant 0 : index
    %c0_2 = arith.constant 0 : index
    %1 = vector.load %arg4[%c0_1, %c0_2] : memref<512x128xf32, #tpu.memory_space<vmem>>, vector<512x128xf32>
    %c0_3 = arith.constant 0 : index
    %c0_4 = arith.constant 0 : index
    %2 = vector.load %arg3[%c0_3, %c0_4] : memref<1x512xf32, #tpu.memory_space<vmem>>, vector<1x512xf32>
    %c0_5 = arith.constant 0 : index
    %c0_6 = arith.constant 0 : index
    %3 = vector.load %arg5[%c0_5, %c0_6] : memref<1x128xf32, #tpu.memory_space<vmem>>, vector<1x128xf32>
    %c0_7 = arith.constant 0 : index
    %c0_8 = arith.constant 0 : index
    %4 = vector.load %arg1[%c0_7, %c0_8] : memref<4x128xf32, #tpu.memory_space<vmem>>, vector<4x128xf32>
    %cst = arith.constant dense<0.000000e+00> : vector<4x512xf32>
    %5 = tpu.matmul %4, %0, %cst {dimension_numbers = #tpu.dot_dimension_numbers<[1], [0], [0], [1], [0, 0, 1, 1], [], []>} : vector<4x128xf32>, vector<128x512xf32>, vector<4x512xf32> -> vector<4x512xf32>
    %6 = vector.broadcast %2 : vector<1x512xf32> to vector<4x512xf32>
    %7 = arith.addf %5, %6 : vector<4x512xf32>
    %cst_9 = arith.constant 0.000000e+00 : f32
    %8 = vector.broadcast %cst_9 : f32 to vector<4x512xf32>
    %9 = arith.maximumf %7, %8 : vector<4x512xf32>
    %cst_10 = arith.constant dense<0.000000e+00> : vector<4x128xf32>
    %10 = tpu.matmul %9, %1, %cst_10 {dimension_numbers = #tpu.dot_dimension_numbers<[1], [0], [0], [1], [0, 0, 1, 1], [], []>} : vector<4x512xf32>, vector<512x128xf32>, vector<4x128xf32> -> vector<4x128xf32>
    %11 = vector.broadcast %3 : vector<1x128xf32> to vector<4x128xf32>
    %12 = arith.addf %10, %11 : vector<4x128xf32>
    %c0_11 = arith.constant 0 : index
    %c0_12 = arith.constant 0 : index
    %13 = vector.load %arg6[%c0_11, %c0_12] : memref<4x128xf32, #tpu.memory_space<vmem>>, vector<4x128xf32>
    tpu.vector_store %arg6[%c0_11, %c0_12], %12 {strides = array<i32>} : memref<4x128xf32, #tpu.memory_space<vmem>>, vector<4x128xf32>,
    return
  }
  func.func @transform_0(%arg0: i32) -> (i32, i32) {
    %c0_i32 = arith.constant 0 : i32
    %c0_i32_0 = arith.constant 0 : i32
    return %arg0, %c0_i32 : i32, i32
  }
  func.func @transform_1(%arg0: i32) -> (i32, i32) {
    %c0_i32 = arith.constant 0 : i32
    %c0_i32_0 = arith.constant 0 : i32
    %c0_i32_1 = arith.constant 0 : i32
    return %c0_i32, %c0_i32_0 : i32, i32
  }
  func.func @transform_2(%arg0: i32) -> (i32, i32) {
    %c0_i32 = arith.constant 0 : i32
    %c0_i32_0 = arith.constant 0 : i32
    %c0_i32_1 = arith.constant 0 : i32
    return %c0_i32, %c0_i32_0 : i32, i32
  }
  func.func @transform_3(%arg0: i32) -> (i32, i32) {
    %c0_i32 = arith.constant 0 : i32
    %c0_i32_0 = arith.constant 0 : i32
    %c0_i32_1 = arith.constant 0 : i32
    return %c0_i32, %c0_i32_0 : i32, i32
  }
  func.func @transform_4(%arg0: i32) -> (i32, i32) {
    %c0_i32 = arith.constant 0 : i32
    %c0_i32_0 = arith.constant 0 : i32
    %c0_i32_1 = arith.constant 0 : i32
    return %c0_i32, %c0_i32_0 : i32, i32
  }
  func.func @transform_5(%arg0: i32) -> (i32, i32) {
    %c0_i32 = arith.constant 0 : i32
    %c0_i32_0 = arith.constant 0 : i32
    return %arg0, %c0_i32 : i32, i32
  }
}

</mosaic_0001>

<bundles_post_ra>
// kernel: feed_forward.1
= control target key start
LH: loop header
LB: loop body
LE: loop exit
PB: predicated region body
PF: predicated region fallthrough
CT: control target
= control target key end

     0   :  { %10 = vsyncpa [#allocation3], 0  ;;  %s826_s0 = inlined_call_operand.vmem [shape: f32[4,128], index: 0, kind: input, shape index: {}]   ;;  %s827_s1 = inlined_call_operand.hbm [shape: f32[128,512], index: 1, kind: input, shape index: {}]   ;;  %s828_s2 = inlined_call_operand.vmem [shape: f32[1,512], index: 2, kind: input, shape index: {}]   ;;  %s829_s3 = inlined_call_operand.hbm [shape: f32[512,128], index: 3, kind: input, shape index: {}]   ;;  %s830_s4 = inlined_call_operand.vmem [shape: f32[1,128], index: 4, kind: input, shape index: {}]   ;;  %s831_s5 = inlined_call_operand.vmem [shape: f32[4,128], index: 5, kind: output, shape index: {}]  }
   0x1   :  { %11 = vsyncpa [#allocation5], 0  ;;  %s753_s18 = smov [#allocation2]   ;;  %s705_s22 = scalar_lea.hbm %s827_s1, 8192 }
   0x2   :  { %s19_s19 = sshll.u32 %s753_s18, 4  ;;  %p706_p0 = scmp.ne.s32.totalorder %s827_s1, %s705_s22  ;;  %s20_s19 = int_to_ptr.vmem [resolvable:$true] %s19_s19 }
   0x3   :  { %p709_p1 = scmp.lt.u32.totalorder %s705_s22, %s827_s1 }
   0x5   :  { %p711_p2 = pnand %p709_p1, %p706_p0 }
   0x7   :  { %714 = shalt.err (!%p711_p2)
}
   0x8   :  { %s715_s27 = scalar_lea.vmem %s20_s19, 8192  ;;  %p720_p4 = scmp.lt.s32.totalorder %s20_s19, %s20_s19 }
   0x9   :  { %p716_p3 = scmp.ne.s32.totalorder %s20_s19, %s715_s27  ;;  %p721_p5 = scmp.lt.s32.totalorder %s715_s27, %s715_s27 }
   0xb   :  { %p722_p6 = por %p721_p5, %p720_p4 }
   0xd   :  { %p723_p7 = pnand %p722_p6, %p716_p3 }
   0xf   :  { %726 = shalt.err (!%p723_p7)
}
  0x10   :  { %s754_s28 = smov 512   ;;  %s755_s29 = smov 32  }
  0x11   :  { %25 = dma.hbm_to_vmem [thread:$0]  %s827_s1, 8192, %s20_s19, [#allocation3], %s754_s28, %s754_s28, %s755_s29  }
  0x12   :  { %s756_s7 = smov [#allocation4]   ;;  %s727_s11 = scalar_lea.hbm %s829_s3, 8192 }
  0x13   :  { %s33_s8 = sshll.u32 %s756_s7, 4  ;;  %p728_p8 = scmp.ne.s32.totalorder %s829_s3, %s727_s11  ;;  %s34_s8 = int_to_ptr.vmem [resolvable:$true] %s33_s8 }
  0x14   :  { %p731_p9 = scmp.lt.u32.totalorder %s727_s11, %s829_s3 }
  0x16   :  { %p733_p10 = pnand %p731_p9, %p728_p8 }
  0x18   :  { %736 = shalt.err (!%p733_p10)
}
  0x19   :  { %s737_s16 = scalar_lea.vmem %s34_s8, 8192  ;;  %p742_p12 = scmp.lt.s32.totalorder %s34_s8, %s34_s8 }
  0x1a   :  { %p738_p11 = scmp.ne.s32.totalorder %s34_s8, %s737_s16  ;;  %p743_p13 = scmp.lt.s32.totalorder %s737_s16, %s737_s16 }
  0x1c   :  { %p744_p0 = por %p743_p13, %p742_p12 }
  0x1e   :  { %p745_p1 = pnand %p744_p0, %p738_p11 }
  0x20   :  { %748 = shalt.err (!%p745_p1)
}
  0x21   :  { %s757_s1 = smov 128   ;;  %s758_s17 = smov 8  }
  0x22   :  { %39 = dma.hbm_to_vmem [thread:$0]  %s829_s3, 8192, %s34_s8, [#allocation5], %s757_s1, %s757_s1, %s758_s17  }
  0x23   :  { %749 = dma.done.wait [#allocation3], 8192  }
  0x24   :  { %750 = vsyncadd [#allocation3], 4294959104 }
  0x25   :  { %751 = dma.done.wait [#allocation5], 8192  }
  0x26   :  { %752 = vsyncadd [#allocation5], 4294959104  ;;  %v759_v0 = vmov 0.0   ;;  %v49_v1 = vld [vmem:[#allocation2 + $0x8] sm:$0xff]  ;;  %v51_v3 = vld [vmem:[#allocation2 + $0x18] sm:$0xff] }
  0x27   :  { %264 = vmatprep.mubr.f32.mxu0 %v759_v0  ;;  %335 = vmatprep.mubr.f32.mxu1 %v759_v0  ;;  %v53_v2 = vld [vmem:[#allocation2 + $0x28] sm:$0xff]  ;;  %v55_v5 = vld [vmem:[#allocation2 + $0x38] sm:$0xff]  ;;  %v48_v6 = vld [vmem:[#allocation2] sm:$0xff] }
  0x28   :  { %v570_v4 = vpack.c.bf16 %v53_v2, %v49_v1  ;;  %v52_v7 = vld [vmem:[#allocation2 + $0x20] sm:$0xff]  ;;  %v602_v8 = vpack.c.bf16 %v55_v5, %v51_v3  ;;  %v50_v10 = vld [vmem:[#allocation2 + $0x10] sm:$0xff]  ;;  %v57_v12 = vld [vmem:[#allocation2 + $0x48] sm:$0xff] }
  0x29   :  { %v572_v9 = vpack.c.bf16 %v52_v7, %v48_v6  ;;  %v54_v11 = vld [vmem:[#allocation2 + $0x30] sm:$0xff]  ;;  %v61_v14 = vld [vmem:[#allocation2 + $0x68] sm:$0xff]  ;;  %v59_v15 = vld [vmem:[#allocation2 + $0x58] sm:$0xff] }
  0x2a   :  { %571 = vmatprep.subr.bf16.mxu0 %v570_v4  ;;  %v604_v13 = vpack.c.bf16 %v54_v11, %v50_v10  ;;  %v63_v16 = vld [vmem:[#allocation2 + $0x78] sm:$0xff]  ;;  %603 = vmatprep.subr.bf16.mxu1 %v602_v8  ;;  %v574_v17 = vpack.c.bf16 %v61_v14, %v57_v12  ;;  %v56_v19 = vld [vmem:[#allocation2 + $0x40] sm:$0xff]  ;;  %v58_v21 = vld [vmem:[#allocation2 + $0x50] sm:$0xff] }
  0x2b   :  { %573 = vmatpush1.bf16.msra.mxu0 %v572_v9  ;;  %v606_v18 = vpack.c.bf16 %v63_v16, %v59_v15  ;;  %v60_v20 = vld [vmem:[#allocation2 + $0x60] sm:$0xff]  ;;  %v62_v23 = vld [vmem:[#allocation2 + $0x70] sm:$0xff]  ;;  %v65_v24 = vld [vmem:[#allocation2 + $0x88] sm:$0xff] }
  0x2c   :  { %605 = vmatpush1.bf16.msra.mxu1 %v604_v13  ;;  %v576_v22 = vpack.c.bf16 %v60_v20, %v56_v19  ;;  %v69_v25 = vld [vmem:[#allocation2 + $0xa8] sm:$0xff]  ;;  %575 = vmatprep.subr.bf16.mxu0 %v574_v17  ;;  %v608_v26 = vpack.c.bf16 %v62_v23, %v58_v21  ;;  %v67_v28 = vld [vmem:[#allocation2 + $0x98] sm:$0xff]  ;;  %v64_v30 = vld [vmem:[#allocation2 + $0x80] sm:$0xff] }
  0x2d   :  { %607 = vmatprep.subr.bf16.mxu1 %v606_v18  ;;  %v578_v27 = vpack.c.bf16 %v69_v25, %v65_v24  ;;  %v71_v29 = vld [vmem:[#allocation2 + $0xb8] sm:$0xff]  ;;  %v68_v32 = vld [vmem:[#allocation2 + $0xa0] sm:$0xff]  ;;  %v66_v33 = vld [vmem:[#allocation2 + $0x90] sm:$0xff] }
  0x2e   :  { %v610_v31 = vpack.c.bf16 %v71_v29, %v67_v28  ;;  %v70_v34 = vld [vmem:[#allocation2 + $0xb0] sm:$0xff]  ;;  %v580_v35 = vpack.c.bf16 %v68_v32, %v64_v30  ;;  %v73_v36 = vld [vmem:[#allocation2 + $0xc8] sm:$0xff]  ;;  %v75_v38 = vld [vmem:[#allocation2 + $0xd8] sm:$0xff] }
  0x2f   :  { %577 = vmatpush1.bf16.msra.mxu0 %v576_v22  ;;  %v77_v37 = vld [vmem:[#allocation2 + $0xe8] sm:$0xff]  ;;  %v612_v39 = vpack.c.bf16 %v70_v34, %v66_v33  ;;  %v79_v41 = vld [vmem:[#allocation2 + $0xf8] sm:$0xff]  ;;  %v72_v42 = vld [vmem:[#allocation2 + $0xc0] sm:$0xff] }
  0x30   :  { %609 = vmatpush1.bf16.msra.mxu1 %v608_v26  ;;  %579 = vmatprep.subr.bf16.mxu0 %v578_v27  ;;  %v582_v40 = vpack.c.bf16 %v77_v37, %v73_v36  ;;  %v76_v43 = vld [vmem:[#allocation2 + $0xe0] sm:$0xff]  ;;  %v614_v44 = vpack.c.bf16 %v79_v41, %v75_v38  ;;  %v74_v45 = vld [vmem:[#allocation2 + $0xd0] sm:$0xff]  ;;  %v81_v47 = vld [vmem:[#allocation2 + $0x108] sm:$0xff] }
  0x31   :  { %611 = vmatprep.subr.bf16.mxu1 %v610_v31  ;;  %v78_v46 = vld [vmem:[#allocation2 + $0xf0] sm:$0xff]  ;;  %v85_v48 = vld [vmem:[#allocation2 + $0x128] sm:$0xff]  ;;  %v83_v49 = vld [vmem:[#allocation2 + $0x118] sm:$0xff]  ;;  %v584_v51 = vpack.c.bf16 %v76_v43, %v72_v42 }
  0x32   :  { %v87_v50 = vld [vmem:[#allocation2 + $0x138] sm:$0xff]  ;;  %v616_v52 = vpack.c.bf16 %v78_v46, %v74_v45  ;;  %v586_v53 = vpack.c.bf16 %v85_v48, %v81_v47  ;;  %v80_v54 = vld [vmem:[#allocation2 + $0x100] sm:$0xff]  ;;  %v82_v56 = vld [vmem:[#allocation2 + $0x110] sm:$0xff] }
  0x33   :  { %581 = vmatpush1.bf16.msra.mxu0 %v580_v35  ;;  %v84_v55 = vld [vmem:[#allocation2 + $0x120] sm:$0xff]  ;;  %v618_v57 = vpack.c.bf16 %v87_v50, %v83_v49  ;;  %v86_v58 = vld [vmem:[#allocation2 + $0x130] sm:$0xff]  ;;  %v89_v59 = vld [vmem:[#allocation2 + $0x148] sm:$0xff] }
  0x34   :  { %613 = vmatpush1.bf16.msra.mxu1 %v612_v39  ;;  %583 = vmatprep.subr.bf16.mxu0 %v582_v40  ;;  %v93_v60 = vld [vmem:[#allocation2 + $0x168] sm:$0xff]  ;;  %v91_v61 = vld [vmem:[#allocation2 + $0x158] sm:$0xff]  ;;  %v588_v63 = vpack.c.bf16 %v84_v55, %v80_v54  ;;  %v620_v0 = vpack.c.bf16 %v86_v58, %v82_v56  ;;  %v88_v2 = vld [vmem:[#allocation2 + $0x140] sm:$0xff] }
  0x35   :  { %615 = vmatprep.subr.bf16.mxu1 %v614_v44  ;;  %v95_v62 = vld [vmem:[#allocation2 + $0x178] sm:$0xff]  ;;  %v590_v1 = vpack.c.bf16 %v93_v60, %v89_v59  ;;  %v92_v3 = vld [vmem:[#allocation2 + $0x160] sm:$0xff]  ;;  %v90_v4 = vld [vmem:[#allocation2 + $0x150] sm:$0xff] }
  0x36   :  { %v622_v5 = vpack.c.bf16 %v95_v62, %v91_v61  ;;  %v94_v6 = vld [vmem:[#allocation2 + $0x170] sm:$0xff]  ;;  %v97_v7 = vld [vmem:[#allocation2 + $0x188] sm:$0xff]  ;;  %v99_v9 = vld [vmem:[#allocation2 + $0x198] sm:$0xff]  ;;  %v592_v11 = vpack.c.bf16 %v92_v3, %v88_v2 }
  0x37   :  { %585 = vmatpush1.bf16.msra.mxu0 %v584_v51  ;;  %v101_v8 = vld [vmem:[#allocation2 + $0x1a8] sm:$0xff]  ;;  %v103_v10 = vld [vmem:[#allocation2 + $0x1b8] sm:$0xff]  ;;  %v624_v12 = vpack.c.bf16 %v94_v6, %v90_v4  ;;  %v96_v14 = vld [vmem:[#allocation2 + $0x180] sm:$0xff] }
  0x38   :  { %617 = vmatpush1.bf16.msra.mxu1 %v616_v52  ;;  %587 = vmatprep.subr.bf16.mxu0 %v586_v53  ;;  %v594_v13 = vpack.c.bf16 %v101_v8, %v97_v7  ;;  %v100_v15 = vld [vmem:[#allocation2 + $0x1a0] sm:$0xff]  ;;  %v98_v16 = vld [vmem:[#allocation2 + $0x190] sm:$0xff]  ;;  %v626_v17 = vpack.c.bf16 %v103_v10, %v99_v9  ;;  %v105_v19 = vld [vmem:[#allocation2 + $0x1c8] sm:$0xff] }
  0x39   :  { %619 = vmatprep.subr.bf16.mxu1 %v618_v57  ;;  %v102_v18 = vld [vmem:[#allocation2 + $0x1b0] sm:$0xff]  ;;  %v109_v20 = vld [vmem:[#allocation2 + $0x1e8] sm:$0xff]  ;;  %v107_v21 = vld [vmem:[#allocation2 + $0x1d8] sm:$0xff]  ;;  %v596_v23 = vpack.c.bf16 %v100_v15, %v96_v14 }
  0x3a   :  { %v111_v22 = vld [vmem:[#allocation2 + $0x1f8] sm:$0xff]  ;;  %v628_v24 = vpack.c.bf16 %v102_v18, %v98_v16  ;;  %v598_v25 = vpack.c.bf16 %v109_v20, %v105_v19  ;;  %v104_v26 = vld [vmem:[#allocation2 + $0x1c0] sm:$0xff]  ;;  %v106_v28 = vld [vmem:[#allocation2 + $0x1d0] sm:$0xff] }
  0x3b   :  { %589 = vmatpush1.bf16.msra.mxu0 %v588_v63  ;;  %v108_v27 = vld [vmem:[#allocation2 + $0x1e0] sm:$0xff]  ;;  %v630_v29 = vpack.c.bf16 %v111_v22, %v107_v21  ;;  %v110_v30 = vld [vmem:[#allocation2 + $0x1f0] sm:$0xff]  ;;  %v129_v32 = vld [vmem:[#allocation4 + $0x88] sm:$0xff] }
  0x3c   :  { %621 = vmatpush1.bf16.msra.mxu1 %v620_v0  ;;  %591 = vmatprep.subr.bf16.mxu0 %v590_v1  ;;  %v128_v31 = vld [vmem:[#allocation4 + $0x80] sm:$0xff]  ;;  %v161_v34 = vld [vmem:[#allocation4 + $0x188] sm:$0xff]  ;;  %v600_v35 = vpack.c.bf16 %v108_v27, %v104_v26  ;;  %v632_v36 = vpack.c.bf16 %v110_v30, %v106_v28  ;;  %v130_v43 = vld [vmem:[#allocation4 + $0x90] sm:$0xff] }
  0x3d   :  { %623 = vmatprep.subr.bf16.mxu1 %v622_v5  ;;  %v160_v33 = vld [vmem:[#allocation4 + $0x180] sm:$0xff]  ;;  %v634_v37 = vpack.c.bf16 %v129_v32, %v128_v31  ;;  %v113_v39 = vld [vmem:[#allocation4 + $0x8] sm:$0xff]  ;;  %v131_v44 = vld [vmem:[#allocation4 + $0x98] sm:$0xff] }
  0x3e   :  { %v112_v38 = vld [vmem:[#allocation4] sm:$0xff]  ;;  %v666_v41 = vpack.c.bf16 %v161_v34, %v160_v33  ;;  %v145_v42 = vld [vmem:[#allocation4 + $0x108] sm:$0xff]  ;;  %v162_v45 = vld [vmem:[#allocation4 + $0x190] sm:$0xff]  ;;  %v638_v50 = vpack.c.bf16 %v131_v44, %v130_v43 }
  0x3f   :  { %593 = vmatpush1.bf16.msra.mxu0 %v592_v11  ;;  %v144_v40 = vld [vmem:[#allocation4 + $0x100] sm:$0xff]  ;;  %v163_v46 = vld [vmem:[#allocation4 + $0x198] sm:$0xff]  ;;  %v636_v48 = vpack.c.bf16 %v113_v39, %v112_v38  ;;  %v114_v51 = vld [vmem:[#allocation4 + $0x10] sm:$0xff] }
  0x40   :  { %625 = vmatpush1.bf16.msra.mxu1 %v624_v12  ;;  %595 = vmatprep.subr.bf16.mxu0 %v594_v13  ;;  %v178_v47 = vld [vmem:[%s826_s0] sm:$0xf]  ;;  %v668_v49 = vpack.c.bf16 %v145_v42, %v144_v40  ;;  %v115_v52 = vld [vmem:[#allocation4 + $0x18] sm:$0xff]  ;;  %v146_v53 = vld [vmem:[#allocation4 + $0x110] sm:$0xff]  ;;  %v670_v54 = vpack.c.bf16 %v163_v46, %v162_v45 }
  0x41   :  { %627 = vmatprep.subr.bf16.mxu1 %v626_v17  ;;  %v147_v55 = vld [vmem:[#allocation4 + $0x118] sm:$0xff]  ;;  %v132_v56 = vld [vmem:[#allocation4 + $0xa0] sm:$0xff]  ;;  %v133_v57 = vld [vmem:[#allocation4 + $0xa8] sm:$0xff]  ;;  %v640_v60 = vpack.c.bf16 %v115_v52, %v114_v51 }
  0x42   :  { %v164_v58 = vld [vmem:[#allocation4 + $0x1a0] sm:$0xff]  ;;  %v165_v59 = vld [vmem:[#allocation4 + $0x1a8] sm:$0xff]  ;;  %v672_v61 = vpack.c.bf16 %v147_v55, %v146_v53  ;;  %v642_v62 = vpack.c.bf16 %v133_v57, %v132_v56  ;;  %v134_v4 = vld [vmem:[#allocation4 + $0xb0] sm:$0xff] }
  0x43   :  { %597 = vmatpush1.bf16.msra.mxu0 %v596_v23  ;;  %v116_v63 = vld [vmem:[#allocation4 + $0x20] sm:$0xff]  ;;  %v117_v0 = vld [vmem:[#allocation4 + $0x28] sm:$0xff]  ;;  %v674_v2 = vpack.c.bf16 %v165_v59, %v164_v58  ;;  %v135_v5 = vld [vmem:[#allocation4 + $0xb8] sm:$0xff] }
  0x44   :  { %629 = vmatpush1.bf16.msra.mxu1 %v628_v24  ;;  %599 = vmatprep.subr.bf16.mxu0 %v598_v25  ;;  %v148_v1 = vld [vmem:[#allocation4 + $0x120] sm:$0xff]  ;;  %v149_v3 = vld [vmem:[#allocation4 + $0x128] sm:$0xff]  ;;  %v166_v6 = vld [vmem:[#allocation4 + $0x1b0] sm:$0xff]  ;;  %v644_v8 = vpack.c.bf16 %v117_v0, %v116_v63  ;;  %v646_v10 = vpack.c.bf16 %v135_v5, %v134_v4 }
  0x45   :  { %631 = vmatprep.subr.bf16.mxu1 %v630_v29  ;;  %v167_v7 = vld [vmem:[#allocation4 + $0x1b8] sm:$0xff]  ;;  %v676_v9 = vpack.c.bf16 %v149_v3, %v148_v1  ;;  %v118_v11 = vld [vmem:[#allocation4 + $0x30] sm:$0xff]  ;;  %v136_v16 = vld [vmem:[#allocation4 + $0xc0] sm:$0xff] }
  0x46   :  { %v119_v12 = vld [vmem:[#allocation4 + $0x38] sm:$0xff]  ;;  %v150_v13 = vld [vmem:[#allocation4 + $0x130] sm:$0xff]  ;;  %v678_v14 = vpack.c.bf16 %v167_v7, %v166_v6  ;;  %v137_v17 = vld [vmem:[#allocation4 + $0xc8] sm:$0xff] }
  0x47   :  { %601 = vmatpush1.bf16.msra.mxu0 %v600_v35  ;;  %v151_v15 = vld [vmem:[#allocation4 + $0x138] sm:$0xff]  ;;  %v168_v18 = vld [vmem:[#allocation4 + $0x1c0] sm:$0xff]  ;;  %v169_v19 = vld [vmem:[#allocation4 + $0x1c8] sm:$0xff]  ;;  %v648_v20 = vpack.c.bf16 %v119_v12, %v118_v11  ;;  %v650_v22 = vpack.c.bf16 %v137_v17, %v136_v16 }
  0x48   :  { %633 = vmatpush1.bf16.msra.mxu1 %v632_v36  ;;  %635 = vmatprep.subr.bf16.mxu0 %v634_v37  ;;  %v680_v21 = vpack.c.bf16 %v151_v15, %v150_v13  ;;  %v120_v23 = vld [vmem:[#allocation4 + $0x40] sm:$0xff]  ;;  %v121_v24 = vld [vmem:[#allocation4 + $0x48] sm:$0xff]  ;;  %v682_v26 = vpack.c.bf16 %v169_v19, %v168_v18  ;;  %v138_v28 = vld [vmem:[#allocation4 + $0xd0] sm:$0xff] }
  0x49   :  { %667 = vmatprep.subr.bf16.mxu1 %v666_v41  ;;  %v152_v25 = vld [vmem:[#allocation4 + $0x140] sm:$0xff]  ;;  %v153_v27 = vld [vmem:[#allocation4 + $0x148] sm:$0xff]  ;;  %v139_v29 = vld [vmem:[#allocation4 + $0xd8] sm:$0xff]  ;;  %v652_v32 = vpack.c.bf16 %v121_v24, %v120_v23 }
  0x4a   :  { %265 = vmatmul.mubr.f32.vlgmr.msra.gmra.mrb[0].mxu0 %v178_v47  ;;  %v170_v30 = vld [vmem:[#allocation4 + $0x1d0] sm:$0xff]  ;;  %v171_v31 = vld [vmem:[#allocation4 + $0x1d8] sm:$0xff]  ;;  %v684_v33 = vpack.c.bf16 %v153_v27, %v152_v25  ;;  %v654_v34 = vpack.c.bf16 %v139_v29, %v138_v28  ;;  %v140_v40 = vld [vmem:[#allocation4 + $0xe0] sm:$0xff] }
  0x4b   :  { %336 = vmatmul.mubr.f32.vlgmr.msra.gmra.mrb[0].mxu1 %v178_v47  ;;  %637 = vmatpush3.bf16.msra.mxu0 %v636_v48  ;;  %v122_v35 = vld [vmem:[#allocation4 + $0x50] sm:$0xff]  ;;  %v123_v36 = vld [vmem:[#allocation4 + $0x58] sm:$0xff]  ;;  %v686_v38 = vpack.c.bf16 %v171_v31, %v170_v30  ;;  %v141_v41 = vld [vmem:[#allocation4 + $0xe8] sm:$0xff] }
  0x4c   :  { %669 = vmatpush3.bf16.msra.mxu1 %v668_v49  ;;  %639 = vmatprep.subr.bf16.mxu0 %v638_v50  ;;  %v154_v37 = vld [vmem:[#allocation4 + $0x150] sm:$0xff]  ;;  %v155_v39 = vld [vmem:[#allocation4 + $0x158] sm:$0xff]  ;;  %v172_v42 = vld [vmem:[#allocation4 + $0x1e0] sm:$0xff]  ;;  %v656_v44 = vpack.c.bf16 %v123_v36, %v122_v35  ;;  %v658_v46 = vpack.c.bf16 %v141_v41, %v140_v40 }
  0x4d   :  { %671 = vmatprep.subr.bf16.mxu1 %v670_v54  ;;  %v173_v43 = vld [vmem:[#allocation4 + $0x1e8] sm:$0xff]  ;;  %v688_v45 = vpack.c.bf16 %v155_v39, %v154_v37  ;;  %v124_v48 = vld [vmem:[#allocation4 + $0x60] sm:$0xff]  ;;  %v142_v54 = vld [vmem:[#allocation4 + $0xf0] sm:$0xff] }
  0x4e   :  { %v690_v47 = vpack.c.bf16 %v173_v43, %v172_v42  ;;  %v125_v49 = vld [vmem:[#allocation4 + $0x68] sm:$0xff]  ;;  %v156_v50 = vld [vmem:[#allocation4 + $0x160] sm:$0xff]  ;;  %v143_v55 = vld [vmem:[#allocation4 + $0xf8] sm:$0xff] }
  0x4f   :  { %641 = vmatpush3.bf16.msra.mxu0 %v640_v60  ;;  %v660_v51 = vpack.c.bf16 %v125_v49, %v124_v48  ;;  %v157_v52 = vld [vmem:[#allocation4 + $0x168] sm:$0xff]  ;;  %v174_v56 = vld [vmem:[#allocation4 + $0x1f0] sm:$0xff]  ;;  %v662_v57 = vpack.c.bf16 %v143_v55, %v142_v54  ;;  %v175_v58 = vld [vmem:[#allocation4 + $0x1f8] sm:$0xff] }
  0x50   :  { %673 = vmatpush3.bf16.msra.mxu1 %v672_v61  ;;  %643 = vmatprep.subr.bf16.mxu0 %v642_v62  ;;  %v692_v53 = vpack.c.bf16 %v157_v52, %v156_v50  ;;  %v126_v59 = vld [vmem:[#allocation4 + $0x70] sm:$0xff]  ;;  %v127_v60 = vld [vmem:[#allocation4 + $0x78] sm:$0xff]  ;;  %v694_v61 = vpack.c.bf16 %v175_v58, %v174_v56  ;;  %v176_v5 = vld [vmem:[%s828_s2] sm:$0xf] }
  0x51   :  { %675 = vmatprep.subr.bf16.mxu1 %v674_v2  ;;  %v664_v62 = vpack.c.bf16 %v127_v60, %v126_v59  ;;  %v158_v63 = vld [vmem:[#allocation4 + $0x170] sm:$0xff]  ;;  %v159_v0 = vld [vmem:[#allocation4 + $0x178] sm:$0xff]  ;;  %v180_v2 = vlaneseq  ;;  %v499_v27 = vld [vmem:[%s830_s4] ss:$0 sm:$0xff] }
  0x52   :  { %v696_v1 = vpack.c.bf16 %v159_v0, %v158_v63 }
  0x53   :  { %645 = vmatpush3.bf16.msra.mxu0 %v644_v8  ;;  %v181_v3 = vshrl.u32 %v180_v2, 7 }
  0x54   :  { %677 = vmatpush3.bf16.msra.mxu1 %v676_v9  ;;  %647 = vmatprep.subr.bf16.mxu0 %v646_v10 }
  0x55   :  { %679 = vmatprep.subr.bf16.mxu1 %v678_v14  ;;  %v182_v4 = vsub.s32 0, %v181_v3  ;;  %v190_v6 = vsub.s32 2, %v181_v3  ;;  %v186_v7 = vsub.s32 1, %v181_v3  ;;  %v194_v8 = vsub.s32 3, %v181_v3 }
  0x57   :  { %649 = vmatpush3.bf16.msra.mxu0 %v648_v20  ;;  %v183_v9 = vrot.slane %v176_v5, %v182_v4  ;;  %v191_v10 = vrot.slane %v176_v5, %v190_v6  ;;  %v187_v11 = vrot.slane %v176_v5, %v186_v7  ;;  %v195_v12 = vrot.slane %v176_v5, %v194_v8 }
  0x58   :  { %681 = vmatpush3.bf16.msra.mxu1 %v680_v21  ;;  %651 = vmatprep.subr.bf16.mxu0 %v650_v22 }
  0x59   :  { %683 = vmatprep.subr.bf16.mxu1 %v682_v26 }
  0x5b   :  { %653 = vmatpush3.bf16.msra.mxu0 %v652_v32 }
  0x5c   :  { %685 = vmatpush3.bf16.msra.mxu1 %v684_v33  ;;  %655 = vmatprep.subr.bf16.mxu0 %v654_v34 }
  0x5d   :  { %687 = vmatprep.subr.bf16.mxu1 %v686_v38 }
  0x5f   :  { %657 = vmatpush3.bf16.msra.mxu0 %v656_v44 }
  0x60   :  { %689 = vmatpush3.bf16.msra.mxu1 %v688_v45  ;;  %659 = vmatprep.subr.bf16.mxu0 %v658_v46 }
  0x61   :  { %691 = vmatprep.subr.bf16.mxu1 %v690_v47 }
  0x63   :  { %661 = vmatpush3.bf16.msra.mxu0 %v660_v51 }
  0x64   :  { %693 = vmatpush3.bf16.msra.mxu1 %v692_v53  ;;  %663 = vmatprep.subr.bf16.mxu0 %v662_v57 }
  0x65   :  { %695 = vmatprep.subr.bf16.mxu1 %v694_v61 }
  0x67   :  { %665 = vmatpush3.bf16.msra.mxu0 %v664_v62 }
  0x68   :  { %697 = vmatpush3.bf16.msra.mxu1 %v696_v1 }
 0x11d   :  { %v266_v13 = vpop.f32.mrb[0].mxu0 }
 0x11e   :  { %v267_v14 = vadd.f32 %v266_v13, %v183_v9  ;;  %v337_v15 = vpop.f32.mrb[0].mxu1  ;;  %v268_v16 = vpop.f32.mrb[1].mxu0 }
 0x11f   :  { %v338_v17 = vadd.f32 %v337_v15, %v191_v10  ;;  %v269_v18 = vadd.f32 %v268_v16, %v187_v11  ;;  %v339_v19 = vpop.f32.mrb[1].mxu1 }
 0x120   :  { %v340_v20 = vadd.f32 %v339_v19, %v195_v12  ;;  %v342_v23 = vmax.f32 %v267_v14, 0.0 }
 0x121   :  { %v344_v21 = vmax.f32 %v338_v17, 0.0  ;;  %v343_v22 = vmax.f32 %v269_v18, 0.0 }
 0x122   :  { %v345_v24 = vmax.f32 %v340_v20, 0.0 }
 0x123   :  { %416 = vmatprep.mubr.f32.mxu0 %v343_v22 }
 0x124   :  { %486 = vmatprep.mubr.f32.mxu1 %v345_v24  ;;  %417 = vmatmul.mubr.f32.vlgmr.msra.gmra.mrb[2].mxu0 %v342_v23 }
 0x125   :  { %487 = vmatmul.mubr.f32.vlgmr.msra.gmra.mrb[2].mxu1 %v344_v21 }
 0x1f7   :  { %v532_v25 = vpop.f32.mrb[2].mxu0 }
 0x1f8   :  { %v567_v26 = vpop.f32.mrb[2].mxu1  ;;  %v533_v28 = vpop.f32.mrb[3].mxu0 }
 0x1f9   :  { %v534_v29 = vadd.f32 %v533_v28, %v532_v25  ;;  %v568_v30 = vpop.f32.mrb[3].mxu1 }
 0x1fa   :  { %v569_v31 = vadd.f32 %v568_v30, %v567_v26 }
 0x1fb   :  { %v419_v32 = vadd.f32 %v534_v29, %v499_v27 }
 0x1fd   :  { %v489_v33 = vadd.f32 %v569_v31, %v419_v32 }
 0x1ff   :  { %492 = vst [vmem:[%s831_s5] sm:$0xf] %v489_v33 }
 0x200   :  { %497 = vsyncpa [#allocation3], 1 }
 0x201   :  { %498 = vsyncpa [#allocation5], 1 }

</bundles_post_ra>
